<compile_context>
chip_gen: v6e
topology: v6e:2x2x1
jax: 0.10.0
libtpu: 0.0.40
codegen_flags: <defaults>
</compile_context>

<pallas_src>
import jax
import jax.numpy as jnp
from jax.experimental import pallas as pl
from jax.experimental.pallas import tpu as pltpu


def aff_kernel(x_ref, r_ref, xg_ref, w1_ref, b1_ref, w2_ref, b2_ref, o_ref):
    # x_ref / r_ref / o_ref : (1, THW, C) tile; xg_ref : (1, 1, C) per-batch
    # precomputed global-attention logits; weights/biases in f32 (BN folded).
    x = x_ref[0].astype(jnp.float32)        # (THW, C)
    res = r_ref[0].astype(jnp.float32)      # (THW, C)
    xa = x + res

    # local attention path: 1x1 conv -> BN -> ReLU -> 1x1 conv -> BN
    h1 = jnp.dot(xa, w1_ref[...], preferred_element_type=jnp.float32) + b1_ref[...]
    h1 = jnp.maximum(h1, 0.0)
    xl = jnp.dot(h1, w2_ref[...], preferred_element_type=jnp.float32) + b2_ref[...]

    # fuse with precomputed global path, sigmoid gate, weighted sum
    wei = jax.nn.sigmoid(xl + xg_ref[0])                 # (THW,C) + (1,C)
    # 2*x*wei + 2*res*(1-wei) == 2*(res + wei*(x - res))  (fewer VPU ops)
    o_ref[0] = (2.0 * (res + wei * (x - res))).astype(o_ref.dtype)


def _pick_tile_hw(hw, c, itemsize, budget_bytes=12 << 20):
    """Rows per spatial tile s.t. x/res/out double-buffered (6 blocks) stay
    under `budget_bytes` (safe for v7x's 64 MiB VMEM; plenty big for v5e/v6e).
    Must divide HW and be sublane (8) aligned unless it covers all of HW."""
    max_rows = max(8, budget_bytes // (6 * c * itemsize))
    if hw <= max_rows:
        return hw
    t = (min(max_rows, hw) // 8) * 8
    while t >= 8:
        if hw % t == 0:
            return t
        t -= 8
    return hw   # fallback: single tile


def aff_forward(x_nhwc, res_nhwc, params):
    """x_nhwc, res_nhwc: (N, H, W, C) channel-last activations (bf16 or f32)."""
    N, H, W, C = x_nhwc.shape
    HW = H * W
    x = x_nhwc.reshape(N, HW, C)            # free reshape (contiguous NHWC)
    r = res_nhwc.reshape(N, HW, C)

    w1, b1, w2, b2, w3, b3, w4, b4 = params
    Ci = w1.shape[1]

    # ---- global attention path precomputed over the FULL spatial extent ----
    xa_mean = jnp.mean(x.astype(jnp.float32) + r.astype(jnp.float32),
                       axis=1, keepdims=True)                      # (N,1,C)
    xg = jnp.maximum(xa_mean @ w3 + b3, 0.0) @ w4 + b4             # (N,1,C) f32

    thw = _pick_tile_hw(HW, C, x.dtype.itemsize)
    grid = (N, HW // thw)

    full = lambda shape: pl.BlockSpec(shape, lambda n, t: (0,) * len(shape))

    out = pl.pallas_call(
        aff_kernel,
        out_shape=jax.ShapeDtypeStruct((N, HW, C), x.dtype),
        grid_spec=pltpu.PrefetchScalarGridSpec(
            num_scalar_prefetch=0,
            grid=grid,
            in_specs=[
                pl.BlockSpec((1, thw, C), lambda n, t: (n, t, 0)),   # x tile
                pl.BlockSpec((1, thw, C), lambda n, t: (n, t, 0)),   # res tile
                pl.BlockSpec((1, 1, C), lambda n, t: (n, 0, 0)),     # xg (per batch)
                full((C, Ci)), full((1, Ci)),                        # local conv1 (BN folded)
                full((Ci, C)), full((1, C)),                         # local conv2 (BN folded)
            ],
            out_specs=pl.BlockSpec((1, thw, C), lambda n, t: (n, t, 0)),
        ),
        compiler_params=pltpu.CompilerParams(
            dimension_semantics=("parallel", "parallel"),
            vmem_limit_bytes=32 * 1024 * 1024),
    )(x, r, xg, w1, b1, w2, b2)

    return out.reshape(N, H, W, C)


def aff_forward_nchw(x_nchw, res_nchw, params):
    """Drop-in NCHW adapter (compatibility only).  In an end-to-end NHWC
    pipeline call aff_forward directly and skip these transposes entirely."""
    x = jnp.transpose(x_nchw, (0, 2, 3, 1))
    r = jnp.transpose(res_nchw, (0, 2, 3, 1))
    out = aff_forward(x, r, params)
    return jnp.transpose(out, (0, 3, 1, 2))


def make_params(key, channels, r):
    """Deterministic weights; BN (eval mode, running stats = 0/1) folded into
    per-channel scale/bias of each 1x1 conv."""
    inter = channels // r
    eps = 1e-5
    ks = jax.random.split(key, 16)

    def conv_bn(k_w, k_b, k_g, k_beta, cin, cout):
        w = jax.random.normal(k_w, (cout, cin), jnp.float32) * 0.1
        b = jax.random.normal(k_b, (cout,), jnp.float32) * 0.1
        gamma = 1.0 + 0.1 * jax.random.normal(k_g, (cout,), jnp.float32)
        beta = 0.1 * jax.random.normal(k_beta, (cout,), jnp.float32)
        run_mean = jnp.zeros((cout,), jnp.float32)
        run_var = jnp.ones((cout,), jnp.float32)
        scale = gamma / jnp.sqrt(run_var + eps)
        w_f = (w * scale[:, None]).T                 # (cin, cout)
        b_f = (b - run_mean) * scale + beta          # (cout,)
        return w_f, b_f.reshape(1, cout)

    w1, b1 = conv_bn(ks[0], ks[1], ks[2], ks[3], channels, inter)      # local 1
    w2, b2 = conv_bn(ks[4], ks[5], ks[6], ks[7], inter, channels)      # local 2
    w3, b3 = conv_bn(ks[8], ks[9], ks[10], ks[11], channels, inter)    # global 1
    w4, b4 = conv_bn(ks[12], ks[13], ks[14], ks[15], inter, channels)  # global 2
    return (w1, b1, w2, b2, w3, b3, w4, b4)


def aff_reference(x_nhwc, res_nhwc, params):
    """Plain-JAX f32 reference (channel-last)."""
    w1, b1, w2, b2, w3, b3, w4, b4 = params
    N, H, W, C = x_nhwc.shape
    x = x_nhwc.reshape(N, H * W, C).astype(jnp.float32)
    r = res_nhwc.reshape(N, H * W, C).astype(jnp.float32)
    xa = x + r
    xl = jnp.maximum(xa @ w1 + b1, 0.0) @ w2 + b2
    ga = jnp.mean(xa, axis=1, keepdims=True)
    xg = jnp.maximum(ga @ w3 + b3, 0.0) @ w4 + b4
    wei = jax.nn.sigmoid(xl + xg)
    out = 2.0 * x * wei + 2.0 * r * (1.0 - wei)
    return out.reshape(N, H, W, C)


if __name__ == "__main__":
    channels, r = 64, 4
    N, H, W = 2, 8, 8

    key = jax.random.PRNGKey(0)
    k_x, k_r, k_p = jax.random.split(key, 3)
    # bf16 activations in HBM (halves memory traffic); kernel computes in f32.
    x = jax.random.normal(k_x, (N, H, W, channels), jnp.float32).astype(jnp.bfloat16)
    residual = jax.random.normal(k_r, (N, H, W, channels), jnp.float32).astype(jnp.bfloat16)
    params = make_params(k_p, channels, r)

    out = jax.block_until_ready(aff_forward(x, residual, params))
    ref = jax.block_until_ready(aff_reference(x, residual, params))

    assert out.shape == (N, H, W, channels)
    assert out.dtype == jnp.bfloat16
    # bf16 output cast => relaxed tolerance vs the f32 reference.
    assert jnp.allclose(out.astype(jnp.float32), ref, atol=5e-2, rtol=2e-2), \
        "mismatch vs reference"
    print("KERNEL_OK")
</pallas_src>

<mosaic_0001>
module attributes {stable_mosaic.version = 11 : i64} {
  func.func @aff_kernel(%arg0: i32, %arg1: i32, %arg2: memref<1x64x64xbf16, #tpu.memory_space<vmem>>, %arg3: memref<1x64x64xbf16, #tpu.memory_space<vmem>>, %arg4: memref<1x1x64xf32, #tpu.memory_space<vmem>>, %arg5: memref<64x16xf32, #tpu.memory_space<vmem>>, %arg6: memref<1x16xf32, #tpu.memory_space<vmem>>, %arg7: memref<16x64xf32, #tpu.memory_space<vmem>>, %arg8: memref<1x64xf32, #tpu.memory_space<vmem>>, %arg9: memref<1x64x64xbf16, #tpu.memory_space<vmem>>) attributes {dimension_semantics = [#tpu.dimension_semantics<parallel>, #tpu.dimension_semantics<parallel>], iteration_bounds = array<i64: 2, 1>, scalar_prefetch = 0 : i64, scratch_operands = 0 : i64, tpu.core_type = #tpu.core_type<tc>, window_params = [{transform_indices = @transform_0, window_bounds = array<i64: 1, 64, 64>}, {transform_indices = @transform_1, window_bounds = array<i64: 1, 64, 64>}, {transform_indices = @transform_2, window_bounds = array<i64: 1, 1, 64>}, {pipeline_mode = #tpu.pipeline_mode<synchronous>, transform_indices = @transform_3, window_bounds = array<i64: 64, 16>}, {pipeline_mode = #tpu.pipeline_mode<synchronous>, transform_indices = @transform_4, window_bounds = array<i64: 1, 16>}, {pipeline_mode = #tpu.pipeline_mode<synchronous>, transform_indices = @transform_5, window_bounds = array<i64: 16, 64>}, {pipeline_mode = #tpu.pipeline_mode<synchronous>, transform_indices = @transform_6, window_bounds = array<i64: 1, 64>}, {transform_indices = @transform_7, window_bounds = array<i64: 1, 64, 64>}]} {
    %c0 = arith.constant 0 : index
    %c0_0 = arith.constant 0 : index
    %c0_1 = arith.constant 0 : index
    %0 = vector.load %arg2[%c0, %c0_0, %c0_1] : memref<1x64x64xbf16, #tpu.memory_space<vmem>>, vector<1x64x64xbf16>
    %1 = vector.shape_cast %0 : vector<1x64x64xbf16> to vector<64x64xbf16>
    %2 = arith.extf %1 : vector<64x64xbf16> to vector<64x64xf32>
    %c0_2 = arith.constant 0 : index
    %c0_3 = arith.constant 0 : index
    %c0_4 = arith.constant 0 : index
    %3 = vector.load %arg3[%c0_2, %c0_3, %c0_4] : memref<1x64x64xbf16, #tpu.memory_space<vmem>>, vector<1x64x64xbf16>
    %4 = vector.shape_cast %3 : vector<1x64x64xbf16> to vector<64x64xbf16>
    %5 = arith.extf %4 : vector<64x64xbf16> to vector<64x64xf32>
    %6 = arith.addf %2, %5 : vector<64x64xf32>
    %c0_5 = arith.constant 0 : index
    %c0_6 = arith.constant 0 : index
    %7 = vector.load %arg5[%c0_5, %c0_6] : memref<64x16xf32, #tpu.memory_space<vmem>>, vector<64x16xf32>
    %cst = arith.constant dense<0.000000e+00> : vector<64x16xf32>
    %8 = tpu.matmul %6, %7, %cst {dimension_numbers = #tpu.dot_dimension_numbers<[1], [0], [0], [1], [0, 0, 1, 1], [], []>} : vector<64x64xf32>, vector<64x16xf32>, vector<64x16xf32> -> vector<64x16xf32>
    %c0_7 = arith.constant 0 : index
    %c0_8 = arith.constant 0 : index
    %9 = vector.load %arg6[%c0_7, %c0_8] : memref<1x16xf32, #tpu.memory_space<vmem>>, vector<1x16xf32>
    %10 = vector.broadcast %9 : vector<1x16xf32> to vector<64x16xf32>
    %11 = arith.addf %8, %10 : vector<64x16xf32>
    %cst_9 = arith.constant 0.000000e+00 : f32
    %12 = vector.broadcast %cst_9 : f32 to vector<64x16xf32>
    %13 = arith.maximumf %11, %12 : vector<64x16xf32>
    %c0_10 = arith.constant 0 : index
    %c0_11 = arith.constant 0 : index
    %14 = vector.load %arg7[%c0_10, %c0_11] : memref<16x64xf32, #tpu.memory_space<vmem>>, vector<16x64xf32>
    %cst_12 = arith.constant dense<0.000000e+00> : vector<64x64xf32>
    %15 = tpu.matmul %13, %14, %cst_12 {dimension_numbers = #tpu.dot_dimension_numbers<[1], [0], [0], [1], [0, 0, 1, 1], [], []>} : vector<64x16xf32>, vector<16x64xf32>, vector<64x64xf32> -> vector<64x64xf32>
    %c0_13 = arith.constant 0 : index
    %c0_14 = arith.constant 0 : index
    %16 = vector.load %arg8[%c0_13, %c0_14] : memref<1x64xf32, #tpu.memory_space<vmem>>, vector<1x64xf32>
    %17 = vector.broadcast %16 : vector<1x64xf32> to vector<64x64xf32>
    %18 = arith.addf %15, %17 : vector<64x64xf32>
    %c0_15 = arith.constant 0 : index
    %c0_16 = arith.constant 0 : index
    %c0_17 = arith.constant 0 : index
    %19 = vector.load %arg4[%c0_15, %c0_16, %c0_17] : memref<1x1x64xf32, #tpu.memory_space<vmem>>, vector<1x1x64xf32>
    %20 = vector.shape_cast %19 : vector<1x1x64xf32> to vector<1x64xf32>
    %21 = vector.broadcast %20 : vector<1x64xf32> to vector<64x64xf32>
    %22 = arith.addf %18, %21 : vector<64x64xf32>
    %23 = arith.negf %22 : vector<64x64xf32>
    %24 = math.exp %23 : vector<64x64xf32>
    %cst_18 = arith.constant 1.000000e+00 : f32
    %25 = vector.broadcast %cst_18 : f32 to vector<64x64xf32>
    %26 = arith.addf %25, %24 : vector<64x64xf32>
    %27 = arith.divf %25, %26 : vector<64x64xf32>
    %28 = arith.subf %2, %5 : vector<64x64xf32>
    %29 = arith.mulf %27, %28 : vector<64x64xf32>
    %30 = arith.addf %5, %29 : vector<64x64xf32>
    %cst_19 = arith.constant 2.000000e+00 : f32
    %31 = vector.broadcast %cst_19 : f32 to vector<64x64xf32>
    %32 = arith.mulf %31, %30 : vector<64x64xf32>
    %33 = arith.truncf %32 : vector<64x64xf32> to vector<64x64xbf16>
    %c0_20 = arith.constant 0 : index
    %c0_21 = arith.constant 0 : index
    %c0_22 = arith.constant 0 : index
    %34 = vector.load %arg9[%c0_20, %c0_21, %c0_22] : memref<1x64x64xbf16, #tpu.memory_space<vmem>>, vector<1x64x64xbf16>
    %35 = vector.shape_cast %34 : vector<1x64x64xbf16> to vector<64x64xbf16>
    %36 = vector.shape_cast %33 : vector<64x64xbf16> to vector<1x64x64xbf16>
    tpu.vector_store %arg9[%c0_20, %c0_21, %c0_22], %36 {strides = array<i32>} : memref<1x64x64xbf16, #tpu.memory_space<vmem>>, vector<1x64x64xbf16>,
    return
  }
  func.func @transform_0(%arg0: i32, %arg1: i32) -> (i32, i32, i32) {
    %c0_i32 = arith.constant 0 : i32
    %c0_i32_0 = arith.constant 0 : i32
    return %arg0, %arg1, %c0_i32 : i32, i32, i32
  }
  func.func @transform_1(%arg0: i32, %arg1: i32) -> (i32, i32, i32) {
    %c0_i32 = arith.constant 0 : i32
    %c0_i32_0 = arith.constant 0 : i32
    return %arg0, %arg1, %c0_i32 : i32, i32, i32
  }
  func.func @transform_2(%arg0: i32, %arg1: i32) -> (i32, i32, i32) {
    %c0_i32 = arith.constant 0 : i32
    %c0_i32_0 = arith.constant 0 : i32
    %c0_i32_1 = arith.constant 0 : i32
    return %arg0, %c0_i32, %c0_i32_0 : i32, i32, i32
  }
  func.func @transform_3(%arg0: i32, %arg1: i32) -> (i32, i32) {
    %c0_i32 = arith.constant 0 : i32
    %c0_i32_0 = arith.constant 0 : i32
    %c0_i32_1 = arith.constant 0 : i32
    return %c0_i32, %c0_i32_0 : i32, i32
  }
  func.func @transform_4(%arg0: i32, %arg1: i32) -> (i32, i32) {
    %c0_i32 = arith.constant 0 : i32
    %c0_i32_0 = arith.constant 0 : i32
    %c0_i32_1 = arith.constant 0 : i32
    return %c0_i32, %c0_i32_0 : i32, i32
  }
  func.func @transform_5(%arg0: i32, %arg1: i32) -> (i32, i32) {
    %c0_i32 = arith.constant 0 : i32
    %c0_i32_0 = arith.constant 0 : i32
    %c0_i32_1 = arith.constant 0 : i32
    return %c0_i32, %c0_i32_0 : i32, i32
  }
  func.func @transform_6(%arg0: i32, %arg1: i32) -> (i32, i32) {
    %c0_i32 = arith.constant 0 : i32
    %c0_i32_0 = arith.constant 0 : i32
    %c0_i32_1 = arith.constant 0 : i32
    return %c0_i32, %c0_i32_0 : i32, i32
  }
  func.func @transform_7(%arg0: i32, %arg1: i32) -> (i32, i32, i32) {
    %c0_i32 = arith.constant 0 : i32
    %c0_i32_0 = arith.constant 0 : i32
    return %arg0, %arg1, %c0_i32 : i32, i32, i32
  }
}

</mosaic_0001>

<bundles_post_ra>
// kernel: tpu_custom_call.1
= control target key start
LH: loop header
LB: loop body
LE: loop exit
PB: predicated region body
PF: predicated region fallthrough
CT: control target
= control target key end

     0   :  { %12 = vsyncpa [#allocation3], 0  ;;  %s1723_s0 = inlined_call_operand.vmem [shape: bf16[2,64,64], index: 0, kind: input, shape index: {}]   ;;  %s1724_s1 = inlined_call_operand.hbm [shape: bf16[2,64,64], index: 1, kind: input, shape index: {}]   ;;  %s1725_s2 = inlined_call_operand.vmem [shape: f32[2,1,64], index: 2, kind: input, shape index: {}]   ;;  %s1726_s3 = inlined_call_operand.vmem [shape: f32[64,16], index: 3, kind: input, shape index: {}]   ;;  %s1727_s4 = inlined_call_operand.vmem [shape: f32[1,16], index: 4, kind: input, shape index: {}]   ;;  %s1728_s5 = inlined_call_operand.vmem [shape: f32[16,64], index: 5, kind: input, shape index: {}]   ;;  %s1729_s6 = inlined_call_operand.vmem [shape: f32[1,64], index: 6, kind: input, shape index: {}]   ;;  %s1730_s7 = inlined_call_operand.hbm [shape: bf16[2,64,64], index: 7, kind: output, shape index: {}]  }
   0x1   :  { %14 = vsyncpa [#allocation3 + $0x1], 0 }
   0x2   :  { %15 = vsyncpa [#allocation4], 0 }
   0x3   :  { %17 = vsyncpa [#allocation4 + $0x1], 0  ;;  %s1390_s24 = smov 0   ;;  %s1392_s25 = smov 0  }
   0x4   :  { %s1394_s26 = smov 0   ;;  %s1396_s27 = smov 0  }
   0x5   :  { %s1398_s28 = smov 0   ;;  %s1400_s29 = smov 0  }
   0x6 LB: > { %s965_s30 = sadd.s32 4294967295, %s1342_s29   ;;  %s966_s8 = sadd.s32 4294967294, %s1342_s29   ;;  %s1342_s29 = sphi %s1400_s29, %s23_s29   ;;  %s1338_s28 = sphi %s1398_s28, %s1744_s28   ;;  %s1334_s27 = sphi %s1396_s27, %s1743_s27   ;;  %s1330_s26 = sphi %s1394_s26, %s1742_s26   ;;  %s1326_s25 = sphi %s1392_s25, %s1741_s25   ;;  %s1322_s24 = sphi %s1390_s24, %s1740_s24  }
   0x7   : > { %s35_s9 = sadd.s32 1, %s1338_s28  ;;  %s72_s10 = sadd.s32 1, %s1330_s26 }
   0x8   : > { %p37_p0 = scmp.ge.s32.totalorder %s35_s9, 2  ;;  %p79_p1 = scmp.ne.s32.totalorder %s1330_s26, %s1326_s25 }
   0x9   : > { %p80_p2 = scmp.eq.s32.totalorder %s1342_s29, 0  ;;  %p85_p3 = scmp.ne.s32.totalorder %s1326_s25, %s1322_s24 }
   0xa   : > { %s1746_s9 = smov (%p37_p0, %s35_s9), 0  ;;  %p86_p5 = scmp.eq.s32.totalorder %s965_s30, 0 }
   0xb   : > { %1732 = sst [smem:[#allocation8_spill]] %s1746_s9  ;;  %p1431_p4 = por %p80_p2, %p79_p1 }
   0xc   : > { %s67_s12 = ssub.s32 %s1338_s28, %s1746_s9  ;;  %p221_p6 = scmp.eq.s32.totalorder %s965_s30, 1 }
   0xd   : > { %p70_p7 = scmp.eq.s32.totalorder %s67_s12, 0  ;;  %p1437_p8 = por %p86_p5, %p85_p3 }
   0xe   : > { %p1441_p9 = por %p221_p6, %p79_p1  ;;  %p227_p10 = scmp.eq.s32.totalorder %s966_s8, 1 }
   0xf   : > { %s1446_s15 = scalar_select %p70_p7, %s1330_s26, %s72_s10  }
  0x10   : > { %p1448_p11 = por %p227_p10, %p85_p3  ;;  %p1148_p13 = scmp.lt.s32.totalorder %s1342_s29, 2 }
  0x11   : > { %s272_s17 = sand.u32 1, %s1330_s26   ;;  %s1017_s19 = sshll.u32 %s1338_s28, 9 }
  0x12   : > { %s969_s18 = sshll.u32 %s272_s17, 5  ;;  %s284_s22 = scalar_lea.hbm %s1724_s1, %s1017_s19 }
  0x13   : > { %s276_s23 = scalar_lea.vmem [#allocation2], %s969_s18  ;;  %p1461_p0 = pnand %p1148_p13, %p1431_p4 }
  0x14   : > { %s285_s30 = sshll.u32 %s276_s23, 4  ;;  %p972_p1 = scmp.ge.s32.totalorder %s1342_s29, 1  ;;  %s286_s30 = int_to_ptr.vmem [resolvable:$true] %s285_s30 }
  0x15   : > { %s273_s10 = scalar_lea.sflag [#allocation3], %s272_s17  ;;  %p1236_p2 = pneg %p1461_p0 }
  0x16   : > { %s1247_s12 = scalar_lea.vmem %s286_s30, 512  ;;  %s1344_s9 = smov [#allocation2]  }
  0x17   : > { %p1248_p3 = scmp.ne.s32.totalorder %s286_s30, %s1247_s12  ;;  %s1252_s20 = sshll.u32 %s1344_s9, 4  ;;  %s1253_s20 = int_to_ptr.vmem [resolvable:$false] %s1252_s20 }
  0x18   : > { %s1254_s18 = scalar_lea.vmem %s1253_s20, 1024  ;;  %p1255_p7 = scmp.lt.s32.totalorder %s286_s30, %s1253_s20 }
  0x19   : > { %p1250_p5 = pnand %p1248_p3, %p1236_p2  ;;  %p1256_p10 = scmp.lt.s32.totalorder %s1254_s18, %s1247_s12 }
  0x1b   : > { %p1251_p6 = pneg %p1250_p5  ;;  %p1257_p12 = por %p1256_p10, %p1255_p7 }
  0x1d   : > { %p1258_p4 = pnand %p1257_p12, %p1251_p6 }
  0x1f   : > { %1261 = shalt.err (!%p1258_p4)
}
  0x20   : > { %s1345_s11 = smov 64   ;;  %s1346_s17 = smov 4  }
  0x21   : > { %1143 = dma.hbm_to_vmem [thread:$0]  (!%p1461_p0), %s284_s22, 512, %s286_s30, %s273_s10, %s1345_s11, %s1345_s11, %s1346_s17  }
  0x22   : > { %p299_p13 = scmp.lt.s32.totalorder %s1342_s29, 3 }
  0x24   : > { %p300_p2 = pnand %p972_p1, %p299_p13 }
  0x25   : > { %s1474_s9 = sand.u32 (!%p300_p2), 1, %s1326_s25  }
  0x26   : > { %303 = sbr.rel (%p300_p2) target bundleno = 526 (0x20e), region = 48  ;;  %s973_s19 = sshll.u32 (!%p300_p2), %s1474_s9, 5 }
  0x27   : > { %s306_s21 = scalar_lea.sflag (!%p300_p2), [#allocation3], %s1474_s9  ;;  %s1480_s23 = scalar_lea.vmem (!%p300_p2), [#allocation2], %s973_s19 }
  0x2b   : > { %1313 = dma.done.wait (%p1437_p8), %s306_s21, 512  }
  0x2c   : > { %1315 = vsyncadd (%p1437_p8), %s306_s21, 4294966784  ;;  %p353_p12 = scmp.lt.s32.totalorder %s1334_s27, 1  ;;  %v414_v0 = vld [vmem:[%s1726_s3 + $0x38] sm:$0xff]  ;;  %v413_v1 = vld [vmem:[%s1726_s3 + $0x30] sm:$0xff]  ;;  %vm422_vm0 = vcmask 523264   ;;  %vm569_vm1 = vcmask 130048  }
  0x2d   : > { %1092 = vmatprep.subr.mxu0 %v414_v0  ;;  %v412_v2 = vld [vmem:[%s1726_s3 + $0x28] sm:$0xff]  ;;  %v1045_v5 = vld [vmem:[%s1480_s23] sm:$0xff]   ;;  %v410_v8 = vld [vmem:[%s1726_s3 + $0x18] sm:$0xff]  ;;  %vm826_vm2 = vcmask 519168   ;;  %s1347_s18 = smov [#allocation5]  }
  0x2e   : > { %s1488_s22 = scalar_select %p353_p12, %s1334_s27, 1  ;;  %1093 = vmatpush3.msra.mxu0 %v414_v0  ;;  %v411_v6 = vld [vmem:[%s1726_s3 + $0x20] sm:$0xff]  ;;  %v1513_v7 = vunpack.c.l.bf16 %v1045_v5  ;;  %v1063_v11 = vld [vmem:[%s1480_s23 + $0x8] sm:$0xff]   ;;  %v409_v12 = vld [vmem:[%s1726_s3 + $0x10] sm:$0xff]  ;;  %v1530_v14 = vunpack.c.h.bf16 %v1045_v5 }
  0x2f   : > { %1094 = vmatprep.subr.mxu0 %v413_v1  ;;  %v408_v15 = vld [vmem:[%s1726_s3 + $0x8] sm:$0xff]  ;;  %v1536_v17 = vunpack.c.l.bf16 %v1063_v11  ;;  %v1064_v19 = vld [vmem:[%s1480_s23 + $0x10] sm:$0xff]   ;;  %v407_v20 = vld [vmem:[%s1726_s3] sm:$0xff]  ;;  %v1549_v23 = vunpack.c.h.bf16 %v1063_v11  ;;  %s1266_s13 = sshll.u32 %s1347_s18, 4  ;;  %s1267_s13 = int_to_ptr.vmem [resolvable:$false] %s1266_s13 }
  0x30   : > { %s1018_s30 = sshll.u32 %s1488_s22, 5  ;;  %1095 = vmatpush3.msra.mxu0 %v413_v1  ;;  %v1555_v26 = vunpack.c.l.bf16 %v1064_v19  ;;  %v1065_v28 = vld [vmem:[%s1480_s23 + $0x18] sm:$0xff]   ;;  %v1566_v31 = vunpack.c.h.bf16 %v1064_v19  ;;  %v561_v40 = vld [vmem:[%s1728_s5 + $0x8] sm:$0xff]  ;;  %v560_v41 = vld [vmem:[%s1728_s5] sm:$0xff]  ;;  %s365_s17 = scalar_lea.vmem %s1725_s2, %s1488_s22 }
  0x31   : > { %s1494_s12 = scalar_lea.vmem %s1723_s0, %s1018_s30  ;;  %1096 = vmatprep.subr.mxu0 %v412_v2  ;;  %v1573_v34 = vunpack.c.l.bf16 %v1065_v28  ;;  %v1580_v37 = vunpack.c.h.bf16 %v1065_v28  ;;  %1120 = vmatprep.subr.mxu1 %v561_v40  ;;  %v977_v42 = vld [vmem:[%s1727_s4] ss:$0 sm:$0xff]  ;;  %s1642_s22 = scalar_lea.vmem [#allocation5], %s973_s19 }
  0x32   : > { %v1506_v3 = vld [vmem:[%s1494_s12] sm:$0xff]   ;;  %1097 = vmatpush3.msra.mxu0 %v412_v2  ;;  %v1522_v10 = vld [vmem:[%s1494_s12 + $0x8] sm:$0xff]   ;;  %v1539_v18 = vld [vmem:[%s1494_s12 + $0x10] sm:$0xff]   ;;  %1121 = vmatpush3.msra.mxu1 %v561_v40  ;;  %s1027_s19 = sshll.u32 %s1334_s27, 9  ;;  %s851_s23 = sshll.u32 %s1642_s22, 4  ;;  %s1671_s23 = int_to_ptr.vmem [resolvable:$true] %s851_s23 }
  0x33   : > { %v1030_v4 = vunpack.c.l.bf16 %v1506_v3  ;;  %1098 = vmatprep.subr.mxu0 %v411_v6  ;;  %v1031_v13 = vunpack.c.h.bf16 %v1506_v3  ;;  %v1034_v16 = vunpack.c.l.bf16 %v1522_v10  ;;  %v1035_v22 = vunpack.c.h.bf16 %v1522_v10  ;;  %v1558_v27 = vld [vmem:[%s1494_s12 + $0x18] sm:$0xff]   ;;  %1122 = vmatprep.subr.mxu1 %v560_v41  ;;  %v986_v5 = vld [vmem:[%s1729_s6] ss:$0 sm:$0xff]  ;;  %s1669_s10 = scalar_lea.hbm %s1730_s7, %s1027_s19  ;;  %s836_s27 = scalar_lea.sflag [#allocation4], %s1474_s9 }
  0x34   : > { %1099 = vmatpush3.msra.mxu0 %v411_v6  ;;  %v1038_v25 = vunpack.c.l.bf16 %v1539_v18  ;;  %v1039_v30 = vunpack.c.h.bf16 %v1539_v18  ;;  %v1042_v33 = vunpack.c.l.bf16 %v1558_v27  ;;  %v1043_v36 = vunpack.c.h.bf16 %v1558_v27  ;;  %1123 = vmatpush3.msra.mxu1 %v560_v41  ;;  %v995_v6 = vld [vmem:[%s365_s17] ss:$0 sm:$0xff]  ;;  %s1262_s20 = scalar_lea.vmem %s1671_s23, 512  ;;  %s1268_s11 = scalar_lea.vmem %s1267_s13, 1024 }
  0x35   : > { %v399_v9 = vadd.f32 %v1513_v7, %v1030_v4  ;;  %1100 = vmatprep.subr.mxu0 %v410_v8  ;;  %v400_v21 = vadd.f32 %v1530_v14, %v1031_v13  ;;  %v401_v24 = vadd.f32 %v1536_v17, %v1034_v16  ;;  %v402_v29 = vadd.f32 %v1549_v23, %v1035_v22  ;;  %p1263_p8 = scmp.ne.s32.totalorder %s1671_s23, %s1262_s20  ;;  %p1269_p3 = scmp.lt.s32.totalorder %s1671_s23, %s1267_s13 }
  0x36   : > { %1101 = vmatpush3.msra.mxu0 %v410_v8  ;;  %v403_v32 = vadd.f32 %v1555_v26, %v1038_v25  ;;  %v404_v35 = vadd.f32 %v1566_v31, %v1039_v30  ;;  %v405_v38 = vadd.f32 %v1573_v34, %v1042_v33  ;;  %v406_v39 = vadd.f32 %v1580_v37, %v1043_v36  ;;  %p1270_p5 = scmp.lt.s32.totalorder %s1268_s11, %s1262_s20 }
  0x37   : > { %1108 = vmatprep.mubr.msk.f32.mxu0 %vm422_vm0, %v399_v9  ;;  %1102 = vmatprep.subr.mxu0 %v409_v12  ;;  %p1264_p0 = pnand %p1263_p8, %p1441_p9 }
  0x38   : > { %1103 = vmatpush3.msra.mxu0 %v409_v12  ;;  %p1271_p6 = por %p1270_p5, %p1269_p3 }
  0x39   : > { %1104 = vmatprep.subr.mxu0 %v408_v15  ;;  %p1265_p1 = pneg %p1264_p0 }
  0x3a   : > { %1105 = vmatpush3.msra.mxu0 %v408_v15 }
  0x3b   : > { %1106 = vmatprep.subr.mxu0 %v407_v20  ;;  %p1272_p7 = pnand %p1271_p6, %p1265_p1 }
  0x3c   : > { %1107 = vmatpush3.msra.mxu0 %v407_v20 }
  0x3d   : > { %1109 = vmatmul.mubr.msk.f32.vlgmr.msra.gmra.mxu0 %vm422_vm0, %v400_v21 }
  0x3e   : > { %1111 = vmatprep.mubr.msk.f32.mxu0 %vm422_vm0, %v401_v24 }
  0x41   : > { %1112 = vmatmul.mubr.msk.f32.gmra.mxu0 %vm422_vm0, %v402_v29 }
  0x42   : > { %1114 = vmatprep.mubr.msk.f32.mxu0 %vm422_vm0, %v403_v32 }
  0x45   : > { %1115 = vmatmul.mubr.msk.f32.gmra.mxu0 %vm422_vm0, %v404_v35 }
  0x46   : > { %1117 = vmatprep.mubr.msk.f32.mxu0 %vm422_vm0, %v405_v38 }
  0x49   : > { %1118 = vmatmul.mubr.msk.f32.gmra.mxu0 %vm422_vm0, %v406_v39 }
  0xfd   : > { %v1110_v43 = vpop.f32.mrf.mxu0 }
  0xfe   : > { %v519_v44 = vadd.f32 %v1110_v43, %v977_v42 }
  0xff   : > { %v513_v45 = vpop.f32.mrf.mxu0 }
 0x100   : > { %v514_v46 = vadd.f32 %v977_v42, %v513_v45  ;;  %v553_v49 = vmax.f32 %v519_v44, 0.0 }
 0x101   : > { %v1113_v47 = vpop.f32.mrf.mxu0 }
 0x102   : > { %v552_v48 = vmax.f32 %v514_v46, 0.0  ;;  %v529_v50 = vadd.f32 %v1113_v47, %v977_v42 }
 0x103   : > { %v523_v51 = vpop.f32.mrf.mxu0 }
 0x104   : > { %v524_v52 = vadd.f32 %v977_v42, %v523_v51  ;;  %1124 = vmatprep.mubr.msk.f32.mxu1 %vm569_vm1, %v552_v48  ;;  %v555_v55 = vmax.f32 %v529_v50, 0.0 }
 0x105   : > { %v1116_v53 = vpop.f32.mrf.mxu0  ;;  %1125 = vmatmul.mubr.msk.f32.vlgmr.msra.gmra.mxu1 %vm569_vm1, %v553_v49 }
 0x106   : > { %v554_v54 = vmax.f32 %v524_v52, 0.0  ;;  %v539_v56 = vadd.f32 %v1116_v53, %v977_v42 }
 0x107   : > { %v533_v57 = vpop.f32.mrf.mxu0 }
 0x108   : > { %v534_v58 = vadd.f32 %v977_v42, %v533_v57  ;;  %1127 = vmatprep.mubr.msk.f32.mxu1 %vm569_vm1, %v554_v54  ;;  %v557_v61 = vmax.f32 %v539_v56, 0.0 }
 0x109   : > { %v1119_v59 = vpop.f32.mrf.mxu0  ;;  %1128 = vmatmul.mubr.msk.f32.gmra.mxu1 %vm569_vm1, %v555_v55 }
 0x10a   : > { %v556_v60 = vmax.f32 %v534_v58, 0.0  ;;  %v549_v62 = vadd.f32 %v1119_v59, %v977_v42 }
 0x10b   : > { %v543_v63 = vpop.f32.mrf.mxu0 }
 0x10c   : > { %v544_v0 = vadd.f32 %v977_v42, %v543_v63  ;;  %1130 = vmatprep.mubr.msk.f32.mxu1 %vm569_vm1, %v556_v60  ;;  %v559_v2 = vmax.f32 %v549_v62, 0.0 }
 0x10d   : > { %1131 = vmatmul.mubr.msk.f32.gmra.mxu1 %vm569_vm1, %v557_v61 }
 0x10e   : > { %v558_v1 = vmax.f32 %v544_v0, 0.0 }
 0x110   : > { %1133 = vmatprep.mubr.msk.f32.mxu1 %vm569_vm1, %v558_v1 }
 0x111   : > { %1134 = vmatmul.mubr.msk.f32.gmra.mxu1 %vm569_vm1, %v559_v2 }
 0x1c5   : > { %v1126_v8 = vpop.f32.mrf.mxu1 }
 0x1c6   : > { %v666_v9 = vadd.f32 %v1126_v8, %v986_v5 }
 0x1c7   : > { %v660_v11 = vpop.f32.mrf.mxu1 }
 0x1c8   : > { %v707_v12 = vadd.f32 %v995_v6, %v666_v9  ;;  %v661_v15 = vadd.f32 %v986_v5, %v660_v11  ;;  %v763_v9 = vsub.f32 %v1031_v13, %v1530_v14  ;;  %v764_v13 = vsub.f32 %v1034_v16, %v1536_v17 }
 0x1c9   : > { %v1129_v19 = vpop.f32.mrf.mxu1 }
 0x1ca   : > { %v997_v20 = vmul.f32 -1.442695, %v707_v12  ;;  %v706_v21 = vadd.f32 %v995_v6, %v661_v15  ;;  %v676_v24 = vadd.f32 %v1129_v19, %v986_v5  ;;  %v762_v15 = vsub.f32 %v1030_v4, %v1513_v7 }
 0x1cb   : > { %v670_v28 = vpop.f32.mrf.mxu1  ;;  %v767_v4 = vsub.f32 %v1039_v30, %v1566_v31  ;;  %v769_v30 = vsub.f32 %v1043_v36, %v1580_v37 }
 0x1cc   : > { %1202 = vpow2.f32 %v997_v20  ;;  %v996_v29 = vmul.f32 -1.442695, %v706_v21  ;;  %v709_v32 = vadd.f32 %v995_v6, %v676_v24  ;;  %v671_v35 = vadd.f32 %v986_v5, %v670_v28 }
 0x1cd   : > { %v1132_v38 = vpop.f32.mrf.mxu1  ;;  %v765_v21 = vsub.f32 %v1035_v22, %v1549_v23 }
 0x1ce   : > { %1204 = vpow2.f32 %v996_v29  ;;  %v999_v39 = vmul.f32 -1.442695, %v709_v32  ;;  %v708_v40 = vadd.f32 %v995_v6, %v671_v35  ;;  %v686_v41 = vadd.f32 %v1132_v38, %v986_v5 }
 0x1cf   : > { %v680_v42 = vpop.f32.mrf.mxu1 }
 0x1d0   : > { %1206 = vpow2.f32 %v999_v39  ;;  %v998_v43 = vmul.f32 -1.442695, %v708_v40  ;;  %v711_v44 = vadd.f32 %v995_v6, %v686_v41  ;;  %v681_v45 = vadd.f32 %v986_v5, %v680_v42 }
 0x1d1   : > { %v1135_v46 = vpop.f32.mrf.mxu1  ;;  %v766_v40 = vsub.f32 %v1038_v25, %v1555_v26 }
 0x1d2   : > { %1208 = vpow2.f32 %v998_v43  ;;  %v1001_v47 = vmul.f32 -1.442695, %v711_v44  ;;  %v710_v48 = vadd.f32 %v995_v6, %v681_v45  ;;  %v696_v49 = vadd.f32 %v1135_v46, %v986_v5 }
 0x1d3   : > { %v690_v50 = vpop.f32.mrf.mxu1  ;;  %v768_v44 = vsub.f32 %v1042_v33, %v1573_v34 }
 0x1d4   : > { %1210 = vpow2.f32 %v1001_v47  ;;  %v1000_v51 = vmul.f32 -1.442695, %v710_v48  ;;  %v713_v52 = vadd.f32 %v995_v6, %v696_v49  ;;  %v691_v53 = vadd.f32 %v986_v5, %v690_v50 }
 0x1d6   : > { %1212 = vpow2.f32 %v1000_v51  ;;  %v1003_v54 = vmul.f32 -1.442695, %v713_v52  ;;  %v712_v55 = vadd.f32 %v995_v6, %v691_v53 }
 0x1d8   : > { %1214 = vpow2.f32 %v1003_v54  ;;  %v1002_v56 = vmul.f32 -1.442695, %v712_v55 }
 0x1d9   : > { %v1203_v57 = vpop.eup %1202 }
 0x1da   : > { %v739_v58 = vadd.f32 1.0, %v1203_v57  ;;  %1216 = vpow2.f32 %v1002_v56 }
 0x1db   : > { %v1205_v59 = vpop.eup %1204 }
 0x1dc   : > { %1218 = vrcp.f32 %v739_v58  ;;  %v738_v60 = vadd.f32 1.0, %v1205_v59 }
 0x1dd   : > { %v1207_v61 = vpop.eup %1206 }
 0x1de   : > { %1220 = vrcp.f32 %v738_v60  ;;  %v741_v62 = vadd.f32 1.0, %v1207_v61 }
 0x1df   : > { %v1209_v63 = vpop.eup %1208 }
 0x1e0   : > { %1222 = vrcp.f32 %v741_v62  ;;  %v740_v0 = vadd.f32 1.0, %v1209_v63 }
 0x1e1   : > { %v1211_v1 = vpop.eup %1210 }
 0x1e2   : > { %1224 = vrcp.f32 %v740_v0  ;;  %v743_v2 = vadd.f32 1.0, %v1211_v1 }
 0x1e3   : > { %v1213_v5 = vpop.eup %1212 }
 0x1e4   : > { %1226 = vrcp.f32 %v743_v2  ;;  %v742_v6 = vadd.f32 1.0, %v1213_v5 }
 0x1e5   : > { %v1215_v8 = vpop.eup %1214 }
 0x1e6   : > { %1228 = vrcp.f32 %v742_v6  ;;  %v745_v11 = vadd.f32 1.0, %v1215_v8 }
 0x1e7   : > { %v1217_v12 = vpop.eup %1216 }
 0x1e8   : > { %1230 = vrcp.f32 %v745_v11  ;;  %v744_v19 = vadd.f32 1.0, %v1217_v12 }
 0x1e9   : > { %v1219_v20 = vpop.eup %1218 }
 0x1ea   : > { %v771_v24 = vmul.f32 %v1219_v20, %v763_v9  ;;  %1232 = vrcp.f32 %v744_v19 }
 0x1eb   : > { %v1221_v28 = vpop.eup %1220 }
 0x1ec   : > { %v779_v29 = vadd.f32 %v1530_v14, %v771_v24  ;;  %v770_v32 = vmul.f32 %v1221_v28, %v762_v15 }
 0x1ed   : > { %v1223_v3 = vpop.eup %1222 }
 0x1ee   : > { %v787_v35 = vmul.f32 2.0, %v779_v29  ;;  %v778_v38 = vadd.f32 %v1513_v7, %v770_v32  ;;  %v773_v22 = vmul.f32 %v1223_v3, %v765_v21 }
 0x1ef   : > { %v1225_v39 = vpop.eup %1224 }
 0x1f0   : > { %v1020_v10 = vpack.c.bf16 %v787_v35, %v787_v35  ;;  %v786_v16 = vmul.f32 2.0, %v778_v38  ;;  %v781_v14 = vadd.f32 %v1549_v23, %v773_v22  ;;  %v772_v41 = vmul.f32 %v1225_v39, %v764_v13 }
 0x1f1   : > { %v1227_v42 = vpop.eup %1226 }
 0x1f2   : > { %828 = vst.msk [vmem:[%s1642_s22 + $0x4] sm:$0xf] %vm826_vm2, %v1020_v10  ;;  %v1019_v7 = vpack.c.bf16 %v786_v16, %v786_v16  ;;  %v789_v18 = vmul.f32 2.0, %v781_v14  ;;  %v780_v25 = vadd.f32 %v1536_v17, %v772_v41  ;;  %v775_v23 = vmul.f32 %v1227_v42, %v767_v4 }
 0x1f3   : > { %v1229_v43 = vpop.eup %1228 }
 0x1f4   : > { %827 = vst.msk [vmem:[%s1642_s22] sm:$0xf] %vm826_vm2, %v1019_v7  ;;  %v1022_v36 = vpack.c.bf16 %v789_v18, %v789_v18  ;;  %v788_v45 = vmul.f32 2.0, %v780_v25  ;;  %v783_v46 = vadd.f32 %v1566_v31, %v775_v23  ;;  %v774_v47 = vmul.f32 %v1229_v43, %v766_v40 }
 0x1f5   : > { %v1231_v48 = vpop.eup %1230 }
 0x1f6   : > { %830 = vst.msk [vmem:[%s1642_s22 + $0xc] sm:$0xf] %vm826_vm2, %v1022_v36  ;;  %v1021_v17 = vpack.c.bf16 %v788_v45, %v788_v45  ;;  %v791_v49 = vmul.f32 2.0, %v783_v46  ;;  %v782_v50 = vadd.f32 %v1555_v26, %v774_v47  ;;  %v777_v27 = vmul.f32 %v1231_v48, %v769_v30 }
 0x1f7   : > { %v1233_v33 = vpop.eup %1232 }
 0x1f8   : > { %829 = vst.msk [vmem:[%s1642_s22 + $0x8] sm:$0xf] %vm826_vm2, %v1021_v17  ;;  %v1024_v51 = vpack.c.bf16 %v791_v49, %v791_v49  ;;  %v790_v52 = vmul.f32 2.0, %v782_v50  ;;  %v785_v31 = vadd.f32 %v1580_v37, %v777_v27  ;;  %v776_v53 = vmul.f32 %v1233_v33, %v768_v44 }
 0x1fa   : > { %832 = vst.msk [vmem:[%s1642_s22 + $0x14] sm:$0xf] %vm826_vm2, %v1024_v51  ;;  %v1023_v54 = vpack.c.bf16 %v790_v52, %v790_v52  ;;  %v793_v55 = vmul.f32 2.0, %v785_v31  ;;  %v784_v56 = vadd.f32 %v1573_v34, %v776_v53 }
 0x1fc   : > { %831 = vst.msk [vmem:[%s1642_s22 + $0x10] sm:$0xf] %vm826_vm2, %v1023_v54  ;;  %v1026_v26 = vpack.c.bf16 %v793_v55, %v793_v55  ;;  %v792_v57 = vmul.f32 2.0, %v784_v56 }
 0x1fe   : > { %834 = vst.msk [vmem:[%s1642_s22 + $0x1c] sm:$0xf] %vm826_vm2, %v1026_v26  ;;  %v1025_v37 = vpack.c.bf16 %v792_v57, %v792_v57 }
 0x200   : > { %833 = vst.msk [vmem:[%s1642_s22 + $0x18] sm:$0xf] %vm826_vm2, %v1025_v37 }
 0x201   : > { %1275 = shalt.err (!%p1272_p7)
}
 0x202   : > { %s1276_s17 = scalar_lea.hbm %s1669_s10, 512  ;;  %s1280_s22 = scalar_lea.hbm %s1730_s7, 1024 }
 0x203   : > { %p1277_p10 = scmp.ne.s32.totalorder %s1669_s10, %s1276_s17  ;;  %p1281_p2 = scmp.lt.s32.totalorder %s1669_s10, %s1730_s7 }
 0x204   : > { %p1282_p12 = scmp.lt.s32.totalorder %s1280_s22, %s1276_s17 }
 0x205   : > { %p1278_p4 = pnand %p1277_p10, %p1441_p9 }
 0x206   : > { %p1283_p8 = por %p1282_p12, %p1281_p2 }
 0x207   : > { %p1279_p13 = pneg %p1278_p4 }
 0x209   : > { %p1284_p0 = pnand %p1283_p8, %p1279_p13 }
 0x20b   : > { %1287 = shalt.err (!%p1284_p0)
}
 0x20c   : > { %s1348_s8 = smov 64   ;;  %s1349_s20 = smov 4  }
 0x20d   : > { %1138 = dma.vmem_to_hbm [thread:$0]  (%p1441_p9), %s1671_s23, 512, %s1669_s10, %s836_s27, %s1348_s8, %s1348_s8, %s1349_s20  }
 0x20e PF: > { %s866_s18 = sand.u32 1, %s1322_s24   ;;  %p1738_p1 = scmp.ge.s32.totalorder %s1342_s29, 2 }
 0x20f   : > { %s867_s13 = scalar_lea.sflag [#allocation4], %s866_s18 }
 0x210   : > { %p1145_p3 = pnand %p1738_p1, %p1448_p11 }
 0x212   : > { %p1146_p5 = pneg %p1145_p3 }
 0x214   : > { %1317 = dma.done.wait (%p1146_p5), %s867_s13, 512  }
 0x215   : > { %1319 = vsyncadd (%p1146_p5), %s867_s13, 4294966784  ;;  %s23_s29 = sadd.s32 1, %s1342_s29   ;;  %s1739_s14 = sld [smem:[#allocation8_spill]] }
 0x216   : > { %p20_p6 = scmp.ge.s32.totalorder %s23_s29, 4   ;;  %s1740_s24 = smov %s1326_s25 }
 0x217   : > { %s1741_s25 = smov %s1330_s26  ;;  %s1742_s26 = smov %s1446_s15 }
 0x218   : > { %s1743_s27 = smov %s1338_s28  ;;  %22 = sbr.rel (!%p20_p6) target bundleno = 6 (0x6), region = 99 }
 0x21b   : > { %s1744_s28 = smov %s1739_s14 }
 0x21d   :  { %872 = vsyncpa [#allocation3], 1 }
 0x21e   :  { %874 = vsyncpa [#allocation3 + $0x1], 1 }
 0x21f   :  { %875 = vsyncpa [#allocation4], 1 }
 0x220   :  { %877 = vsyncpa [#allocation4 + $0x1], 1 }

</bundles_post_ra>
